<compile_context>
chip_gen: v6e
topology: v6e:2x2x1
jax: 0.10.0
libtpu: 0.0.40
codegen_flags: <defaults>
</compile_context>

<pallas_src>
import math
from functools import partial

import jax
import jax.numpy as jnp
from jax.experimental import pallas as pl
from jax.experimental.pallas import tpu as pltpu


# ---------------------------------------------------------------------------
# Fast cube root (kernel-only).
# Inverse-cube-root bit-trick seed + 3 divide-free Newton steps, all on the
# VPU.  Replaces jnp.power(y, 1/3) (exp + log on the single EUP slot) in the
# Luv path; relative error ~3e-10 over the range that matters (y > 0.0088).
# ---------------------------------------------------------------------------
def _cbrt_fast(y):
    y_safe = jnp.maximum(y, 1e-20)
    # Seed: bits(y^(-1/3)) ~= K - bits(y)/3.  The exponent arithmetic is done
    # in f32 (error < 2^-23 in log-space) to avoid integer division.
    bits_f = pltpu.bitcast(y_safe, jnp.int32).astype(jnp.float32)
    seed_bits = (1.4199671e9 - bits_f * (1.0 / 3.0)).astype(jnp.int32)
    r = pltpu.bitcast(seed_bits, jnp.float32)        # ~ y^(-1/3), ~4% error
    y_third = y_safe * (1.0 / 3.0)
    for _ in range(3):                               # e -> ~2*e^2 per step
        r = r * (4.0 / 3.0 - y_third * (r * r * r))
    return y_safe * r * r                            # y * y^(-2/3) = y^(1/3)


# ---------------------------------------------------------------------------
# Shared math (used by the Pallas kernel AND the pure-JAX reference check).
# fast_math=True is kernel-only (uses pltpu.bitcast); the reference keeps the
# kornia-faithful jnp.power formulation.
# ---------------------------------------------------------------------------
def _convert(r, g, b, target_space, *, fast_math=False):
    """Elementwise color conversion on three same-shaped channel arrays."""
    if target_space == "rgb":
        return r, g, b

    if target_space == "xyz":
        # kornia.color.rgb_to_xyz — 3x3 matrix, 9 FMAs/pixel, stays on VPU.
        x = 0.412453 * r + 0.357580 * g + 0.180423 * b
        y = 0.212671 * r + 0.715160 * g + 0.072169 * b
        z = 0.019334 * r + 0.119193 * g + 0.950227 * b
        return x, y, z

    if target_space == "hsv":
        # kornia.color.rgb_to_hsv (eps = 1e-8, hue scaled to [0, 2*pi]).
        # Exact divides kept on purpose (bit-faithful; mem-bound path).
        eps = 1e-8
        maxc = jnp.maximum(jnp.maximum(r, g), b)
        minc = jnp.minimum(jnp.minimum(r, g), b)
        delta = maxc - minc

        v = maxc
        s = delta / (maxc + eps)

        deltac = jnp.where(delta == 0.0, jnp.ones_like(delta), delta)
        rc = maxc - r
        gc = maxc - g
        bc = maxc - b

        h1 = bc - gc
        h2 = (rc - bc) + 2.0 * deltac
        h3 = (gc - rc) + 4.0 * deltac

        # gather(argmax over channel) with first-occurrence tie-break (r,g,b),
        # matching torch.max over dim=-3.
        is_r = maxc == r
        is_g = jnp.logical_and(maxc == g, jnp.logical_not(is_r))
        h = jnp.where(is_r, h1, jnp.where(is_g, h2, h3))

        h = h / deltac
        h = (h * (1.0 / 6.0)) % 1.0
        h = (2.0 * math.pi) * h
        return h, s, v

    if target_space == "luv":
        # kornia.color.rgb_to_luv: sRGB -> linear RGB -> XYZ -> Luv
        eps = 1e-12

        def lin(c):
            # Clamp the pow argument so the unselected where-branch can't
            # produce NaN for (unexpected) inputs below -0.055.
            t = jnp.maximum(c + 0.055, 0.0) * (1.0 / 1.055)
            # TODO(synk): a minimax polynomial on [0.04045, 1] would remove
            # the remaining 6 EUP ops/pixel (~2-3x on luv) at an accuracy
            # tradeoff vs kornia; kept exact here.
            return jnp.where(c > 0.04045, jnp.power(t, 2.4), c * (1.0 / 12.92))

        rl = lin(r)
        gl = lin(g)
        bl = lin(b)

        x = 0.412453 * rl + 0.357580 * gl + 0.180423 * bl
        y = 0.212671 * rl + 0.715160 * gl + 0.072169 * bl
        z = 0.019334 * rl + 0.119193 * gl + 0.950227 * bl

        threshold = 0.008856
        if fast_math:
            y_cbrt = _cbrt_fast(y)            # VPU-only; frees the EUP slot
        else:
            y_cbrt = jnp.power(y, 1.0 / 3.0)  # kornia-faithful reference
        L = jnp.where(y > threshold, 116.0 * y_cbrt - 16.0, 903.3 * y)

        # D65 reference white.
        xr, yr, zr = 0.95047, 1.0, 1.08883
        wden = xr + 15.0 * yr + 3.0 * zr
        u_w = (4.0 * xr) / wden
        v_w = (9.0 * yr) / wden

        denom = x + 15.0 * y + 3.0 * z + eps
        inv_denom = 1.0 / denom               # one divide shared by u_p, v_p
        u_p = 4.0 * x * inv_denom
        v_p = 9.0 * y * inv_denom

        u = 13.0 * L * (u_p - u_w)
        v = 13.0 * L * (v_p - v_w)
        return L, u, v

    raise ValueError("this should not happen")


# ---------------------------------------------------------------------------
# Pallas kernel
# ---------------------------------------------------------------------------
def _make_kernel(target_space: str):
    """Kernel over a fused (1, 3, TILE_R, LANE) block. Branch is trace-time."""
    assert target_space in ("hsv", "luv", "xyz")

    def kernel(x_ref, o_ref):
        r = x_ref[0, 0, :, :]
        g = x_ref[0, 1, :, :]
        b = x_ref[0, 2, :, :]
        c0, c1, c2 = _convert(r, g, b, target_space, fast_math=True)
        o_ref[0, 0, :, :] = c0
        o_ref[0, 1, :, :] = c1
        o_ref[0, 2, :, :] = c2

    return kernel


# Tiling parameters: 256K f32 elems per channel plane per block
# => 3 * 256K * 4 B = 3 MiB per fused buffer, ~12 MiB double-buffered
# (in + out), plus elementwise temporaries — comfortably under the explicit
# 48 MiB scoped-VMEM limit on every generation (v7x physical = 64 MiB).
_TARGET_BLOCK_ELEMS = 256 * 1024
_MAX_LANE = 2048
_VMEM_LIMIT_BYTES = 48 << 20
_MIN_GRID_STEPS = 8   # keep both v7x TensorCores fed on small batches


@partial(jax.jit, static_argnames="target_space")
def rgb2space(x: jax.Array, target_space: str) -> jax.Array:
    """Pallas implementation of Rgb2Space.forward.

    x: (N, 3, H, W) float32 NCHW, values expected in [0, 1].
    Returns (N, 3, H, W) in the requested color space.
    """
    if target_space not in ("rgb", "hsv", "luv", "xyz"):
        raise ValueError("this should not happen")

    # Identity passthrough: zero work, exact equality.
    if target_space == "rgb":
        return x

    n, c, h, w = x.shape
    assert c == 3, "Rgb2Space expects 3 input channels (RGB)"

    # Flatten spatial dims and refactor onto a lane-dense (R, LANE) grid.
    p = h * w
    x3 = x.reshape(n, 3, p)
    pad = (-p) % 128
    if pad:
        # Rare fallback (H*W not a multiple of 128): pad the flattened
        # spatial axis so a lane-dense layout is always possible.
        # NOTE: the pad and the final slice each re-materialize the tensor,
        # so this path costs ~3x the HBM traffic of the aligned path.
        x3 = jnp.pad(x3, ((0, 0), (0, 0), (0, pad)))
    p_pad = p + pad

    lane = 128
    for cand in range(min(_MAX_LANE, p_pad), 127, -128):
        if p_pad % cand == 0:
            lane = cand
            break
    rows = p_pad // lane
    x4 = x3.reshape(n, 3, rows, lane)

    # Row tile: multiple of 8 when tiling, or the full row extent.
    target_rows = max(8, (_TARGET_BLOCK_ELEMS // lane) // 8 * 8)
    tile_r = rows if rows <= target_rows else target_rows

    # Guarantee enough grid steps so megacore (v7x) parallelism has work:
    # shrink tile_r (keeping it a multiple of 8) until >= _MIN_GRID_STEPS
    # or tile_r bottoms out at 8.
    while tile_r > 8 and n * (-(-rows // tile_r)) < _MIN_GRID_STEPS:
        tile_r = max(8, (tile_r // 2) // 8 * 8)

    grid = (n, pl.cdiv(rows, tile_r))
    spec = pl.BlockSpec((1, 3, tile_r, lane), lambda i, j: (i, 0, j, 0))

    out = pl.pallas_call(
        _make_kernel(target_space),
        out_shape=jax.ShapeDtypeStruct((n, 3, rows, lane), x.dtype),
        grid=grid,
        in_specs=[spec],
        out_specs=spec,
        compiler_params=pltpu.CompilerParams(
            dimension_semantics=("parallel", "parallel"),
            vmem_limit_bytes=_VMEM_LIMIT_BYTES,
        ),
    )(x4)

    out = out.reshape(n, 3, p_pad)
    if pad:
        out = out[:, :, :p]
    return out.reshape(n, 3, h, w)


# ---------------------------------------------------------------------------
# Pure-JAX reference (kornia-faithful math, channel axis kept).
# ---------------------------------------------------------------------------
def rgb2space_reference(x: jax.Array, target_space: str) -> jax.Array:
    c0, c1, c2 = _convert(x[:, 0], x[:, 1], x[:, 2], target_space, fast_math=False)
    return jnp.stack([c0, c1, c2], axis=1)


if __name__ == "__main__":
    key = jax.random.PRNGKey(0)
    shapes = [
        (2, 3, 16, 16),   # small, lane = 256, rows = 1
        (2, 3, 40, 80),   # p = 3200 -> lane = 640, rows = 5
        (1, 3, 10, 10),   # p = 100: exercises the ragged-pad fallback
    ]
    for shape in shapes:
        x = jax.random.uniform(key, shape, dtype=jnp.float32)
        for space in ("hsv", "luv", "xyz"):
            out = rgb2space(x, space)
            jax.block_until_ready(out)
            assert out.shape == x.shape and out.dtype == x.dtype, (shape, space)
            ref = rgb2space_reference(x, space)
            assert bool(jnp.allclose(out, ref, rtol=1e-3, atol=1e-3)), (shape, space)
        # Identity branch is short-circuited in the wrapper and must be exact.
        out_rgb = rgb2space(x, "rgb")
        jax.block_until_ready(out_rgb)
        assert bool(jnp.all(out_rgb == x)), shape

    print("KERNEL_OK")
</pallas_src>

<mosaic_0001>
module attributes {stable_mosaic.version = 11 : i64} {
  func.func @kernel(%arg0: i32, %arg1: i32, %arg2: memref<1x3x1x256xf32, #tpu.memory_space<vmem>>, %arg3: memref<1x3x1x256xf32, #tpu.memory_space<vmem>>) attributes {dimension_semantics = [#tpu.dimension_semantics<parallel>, #tpu.dimension_semantics<parallel>], iteration_bounds = array<i64: 2, 1>, scalar_prefetch = 0 : i64, scratch_operands = 0 : i64, tpu.core_type = #tpu.core_type<tc>, window_params = [{transform_indices = @transform_0, window_bounds = array<i64: 1, 3, 1, 256>}, {transform_indices = @transform_1, window_bounds = array<i64: 1, 3, 1, 256>}]} {
    %c0 = arith.constant 0 : index
    %c0_0 = arith.constant 0 : index
    %c0_1 = arith.constant 0 : index
    %c0_2 = arith.constant 0 : index
    %0 = vector.load %arg2[%c0, %c0_0, %c0_1, %c0_2] : memref<1x3x1x256xf32, #tpu.memory_space<vmem>>, vector<1x1x1x256xf32>
    %1 = vector.shape_cast %0 : vector<1x1x1x256xf32> to vector<1x256xf32>
    %c0_3 = arith.constant 0 : index
    %c1 = arith.constant 1 : index
    %c0_4 = arith.constant 0 : index
    %c0_5 = arith.constant 0 : index
    %2 = vector.load %arg2[%c0_3, %c1, %c0_4, %c0_5] : memref<1x3x1x256xf32, #tpu.memory_space<vmem>>, vector<1x1x1x256xf32>
    %3 = vector.shape_cast %2 : vector<1x1x1x256xf32> to vector<1x256xf32>
    %c0_6 = arith.constant 0 : index
    %c2 = arith.constant 2 : index
    %c0_7 = arith.constant 0 : index
    %c0_8 = arith.constant 0 : index
    %4 = vector.load %arg2[%c0_6, %c2, %c0_7, %c0_8] : memref<1x3x1x256xf32, #tpu.memory_space<vmem>>, vector<1x1x1x256xf32>
    %5 = vector.shape_cast %4 : vector<1x1x1x256xf32> to vector<1x256xf32>
    %6 = arith.maximumf %1, %3 : vector<1x256xf32>
    %7 = arith.maximumf %6, %5 : vector<1x256xf32>
    %8 = arith.minimumf %1, %3 : vector<1x256xf32>
    %9 = arith.minimumf %8, %5 : vector<1x256xf32>
    %10 = arith.subf %7, %9 : vector<1x256xf32>
    %cst = arith.constant 9.99999993E-9 : f32
    %11 = vector.broadcast %cst : f32 to vector<1x256xf32>
    %12 = arith.addf %7, %11 : vector<1x256xf32>
    %13 = arith.divf %10, %12 : vector<1x256xf32>
    %cst_9 = arith.constant 0.000000e+00 : f32
    %14 = vector.broadcast %cst_9 : f32 to vector<1x256xf32>
    %15 = arith.cmpf oeq, %10, %14 : vector<1x256xf32>
    %cst_10 = arith.constant 1.000000e+00 : f32
    %16 = vector.broadcast %cst_10 : f32 to vector<1x256xf32>
    %17 = arith.select %15, %16, %10 : vector<1x256xi1>, vector<1x256xf32>
    %18 = arith.subf %7, %1 : vector<1x256xf32>
    %19 = arith.subf %7, %3 : vector<1x256xf32>
    %20 = arith.subf %7, %5 : vector<1x256xf32>
    %21 = arith.subf %20, %19 : vector<1x256xf32>
    %22 = arith.subf %18, %20 : vector<1x256xf32>
    %cst_11 = arith.constant 2.000000e+00 : f32
    %23 = vector.broadcast %cst_11 : f32 to vector<1x256xf32>
    %24 = arith.mulf %23, %17 : vector<1x256xf32>
    %25 = arith.addf %22, %24 : vector<1x256xf32>
    %26 = arith.subf %19, %18 : vector<1x256xf32>
    %cst_12 = arith.constant 4.000000e+00 : f32
    %27 = vector.broadcast %cst_12 : f32 to vector<1x256xf32>
    %28 = arith.mulf %27, %17 : vector<1x256xf32>
    %29 = arith.addf %26, %28 : vector<1x256xf32>
    %30 = arith.cmpf oeq, %7, %1 : vector<1x256xf32>
    %31 = arith.cmpf oeq, %7, %3 : vector<1x256xf32>
    %cst_13 = arith.constant dense<true> : vector<1x256xi1>
    %32 = arith.xori %30, %cst_13 : vector<1x256xi1>
    %33 = arith.andi %31, %32 : vector<1x256xi1>
    %34 = arith.select %33, %25, %29 : vector<1x256xi1>, vector<1x256xf32>
    %35 = arith.select %30, %21, %34 : vector<1x256xi1>, vector<1x256xf32>
    %36 = arith.divf %35, %17 : vector<1x256xf32>
    %cst_14 = arith.constant 0.166666672 : f32
    %37 = vector.broadcast %cst_14 : f32 to vector<1x256xf32>
    %38 = arith.mulf %36, %37 : vector<1x256xf32>
    %cst_15 = arith.constant 1.000000e+00 : f32
    %39 = vector.broadcast %cst_15 : f32 to vector<1x256xf32>
    %40 = arith.remf %38, %39 : vector<1x256xf32>
    %cst_16 = arith.constant 0.000000e+00 : f32
    %41 = vector.broadcast %cst_16 : f32 to vector<1x256xf32>
    %42 = arith.cmpf one, %40, %41 : vector<1x256xf32>
    %cst_17 = arith.constant 0.000000e+00 : f32
    %43 = vector.broadcast %cst_17 : f32 to vector<1x256xf32>
    %44 = arith.cmpf olt, %40, %43 : vector<1x256xf32>
    %cst_18 = arith.constant 0.000000e+00 : f32
    %45 = arith.cmpf olt, %cst_15, %cst_18 : f32
    %46 = vector.broadcast %45 : i1 to vector<1x256xi1>
    %47 = vector.broadcast %46 : vector<1x256xi1> to vector<1x256xi1>
    %48 = arith.xori %44, %47 : vector<1x256xi1>
    %49 = arith.andi %48, %42 : vector<1x256xi1>
    %50 = vector.broadcast %cst_15 : f32 to vector<1x256xf32>
    %51 = arith.addf %40, %50 : vector<1x256xf32>
    %52 = arith.select %49, %51, %40 : vector<1x256xi1>, vector<1x256xf32>
    %cst_19 = arith.constant 6.28318548 : f32
    %53 = vector.broadcast %cst_19 : f32 to vector<1x256xf32>
    %54 = arith.mulf %53, %52 : vector<1x256xf32>
    %c0_20 = arith.constant 0 : index
    %c0_21 = arith.constant 0 : index
    %c0_22 = arith.constant 0 : index
    %c0_23 = arith.constant 0 : index
    %55 = vector.load %arg3[%c0_20, %c0_21, %c0_22, %c0_23] : memref<1x3x1x256xf32, #tpu.memory_space<vmem>>, vector<1x1x1x256xf32>
    %56 = vector.shape_cast %55 : vector<1x1x1x256xf32> to vector<1x256xf32>
    %57 = vector.shape_cast %54 : vector<1x256xf32> to vector<1x1x1x256xf32>
    tpu.vector_store %arg3[%c0_20, %c0_21, %c0_22, %c0_23], %57 {strides = array<i32>} : memref<1x3x1x256xf32, #tpu.memory_space<vmem>>, vector<1x1x1x256xf32>,
    %c0_24 = arith.constant 0 : index
    %c1_25 = arith.constant 1 : index
    %c0_26 = arith.constant 0 : index
    %c0_27 = arith.constant 0 : index
    %58 = vector.load %arg3[%c0_24, %c1_25, %c0_26, %c0_27] : memref<1x3x1x256xf32, #tpu.memory_space<vmem>>, vector<1x1x1x256xf32>
    %59 = vector.shape_cast %58 : vector<1x1x1x256xf32> to vector<1x256xf32>
    %60 = vector.shape_cast %13 : vector<1x256xf32> to vector<1x1x1x256xf32>
    tpu.vector_store %arg3[%c0_24, %c1_25, %c0_26, %c0_27], %60 {strides = array<i32>} : memref<1x3x1x256xf32, #tpu.memory_space<vmem>>, vector<1x1x1x256xf32>,
    %c0_28 = arith.constant 0 : index
    %c2_29 = arith.constant 2 : index
    %c0_30 = arith.constant 0 : index
    %c0_31 = arith.constant 0 : index
    %61 = vector.load %arg3[%c0_28, %c2_29, %c0_30, %c0_31] : memref<1x3x1x256xf32, #tpu.memory_space<vmem>>, vector<1x1x1x256xf32>
    %62 = vector.shape_cast %61 : vector<1x1x1x256xf32> to vector<1x256xf32>
    %63 = vector.shape_cast %7 : vector<1x256xf32> to vector<1x1x1x256xf32>
    tpu.vector_store %arg3[%c0_28, %c2_29, %c0_30, %c0_31], %63 {strides = array<i32>} : memref<1x3x1x256xf32, #tpu.memory_space<vmem>>, vector<1x1x1x256xf32>,
    return
  }
  func.func @transform_0(%arg0: i32, %arg1: i32) -> (i32, i32, i32, i32) {
    %c0_i32 = arith.constant 0 : i32
    %c0_i32_0 = arith.constant 0 : i32
    %c0_i32_1 = arith.constant 0 : i32
    return %arg0, %c0_i32, %arg1, %c0_i32_0 : i32, i32, i32, i32
  }
  func.func @transform_1(%arg0: i32, %arg1: i32) -> (i32, i32, i32, i32) {
    %c0_i32 = arith.constant 0 : i32
    %c0_i32_0 = arith.constant 0 : i32
    %c0_i32_1 = arith.constant 0 : i32
    return %arg0, %c0_i32, %arg1, %c0_i32_0 : i32, i32, i32, i32
  }
}

</mosaic_0001>

<bundles_post_ra>
// kernel: rgb2space.1
= control target key start
LH: loop header
LB: loop body
LE: loop exit
PB: predicated region body
PF: predicated region fallthrough
CT: control target
= control target key end

     0   :  { %s366_s6 = smov 0   ;;  %s368_s7 = smov 0   ;;  %s414_s0 = inlined_call_operand.vmem [shape: f32[2,3,1,256], index: 0, kind: input, shape index: {}]   ;;  %s415_s1 = inlined_call_operand.vmem [shape: f32[2,3,1,256], index: 1, kind: output, shape index: {}]  }
   0x1   :  { %s370_s8 = smov 0  }
   0x2 LB: > { %s23_s9 = sadd.s32 1, %s349_s7  ;;  %p294_p0 = scmp.ge.s32.totalorder %s353_s8, 1  ;;  %s353_s8 = sphi %s370_s8, %s11_s8   ;;  %s349_s7 = sphi %s368_s7, %s419_s7   ;;  %s345_s6 = sphi %s366_s6, %s418_s6  }
   0x3   : > { %p25_p1 = scmp.ge.s32.totalorder %s23_s9, 2  ;;  %p106_p2 = scmp.lt.s32.totalorder %s353_s8, 3 }
   0x5   : > { %s421_s9 = smov (%p25_p1, %s23_s9), 0  ;;  %p107_p3 = pnand %p294_p0, %p106_p2 }
   0x6   : > { %p132_p4 = scmp.lt.s32.totalorder (!%p107_p3), %s345_s6, 1 }
   0x7   : > { %110 = sbr.rel (%p107_p3) target bundleno = 61 (0x3d), region = 24 }
   0xc   : > { %s423_s6 = smov (!%p132_p4, %s345_s6), 1  ;;  %v198_v0 = vlaneseq  ;;  %vm355_vm4 = vmmov 1  }
   0xd   : > { %s301_s10 = smul.u32 6, %s423_s6 }
   0xe   : > { %vm392_vm0 = vcmp.lt.s32.totalorder %v198_v0, 256 }
   0xf   : > { %s139_s13 = scalar_lea.vmem %s414_s0, %s301_s10  ;;  %s390_s16 = scalar_lea.vmem %s415_s1, %s301_s10 }
  0x10   : > { %v148_v1 = vld [vmem:[%s139_s13] sm:$0x3]  ;;  %v295_v2 = vld [vmem:[%s139_s13 + $0x2] sm:$0x3]  ;;  %v296_v3 = vld [vmem:[%s139_s13 + $0x4] sm:$0x3] }
  0x11   : > { %v153_v4 = vmax.f32 %v148_v1, %v295_v2  ;;  %v155_v5 = vmin.f32 %v148_v1, %v295_v2 }
  0x13   : > { %v154_v7 = vmax.f32 %v153_v4, %v296_v3  ;;  %v156_v8 = vmin.f32 %v155_v5, %v296_v3 }
  0x15   : > { %v157_v9 = vsub.f32 %v154_v7, %v156_v8  ;;  %v163_v10 = vsub.f32 %v154_v7, %v148_v1  ;;  %v164_v11 = vsub.f32 %v154_v7, %v295_v2  ;;  %v165_v12 = vsub.f32 %v154_v7, %v296_v3  ;;  %298 = vst.msk [vmem:[%s390_s16 + $0x4] sm:$0x3] %vm392_vm0, %v154_v7 }
  0x16   : > { %v158_v13 = vadd.f32 1e-08, %v154_v7  ;;  %vm173_vm2 = vcmp.eq.f32.partialorder %v154_v7, %v148_v1  ;;  %vm174_vm3 = vcmp.eq.f32.partialorder %v154_v7, %v295_v2 }
  0x17   : > { %vm161_vm1 = vcmp.eq.f32.partialorder %v157_v9, 0.0  ;;  %v167_v15 = vsub.f32 %v163_v10, %v165_v12  ;;  %v170_v17 = vsub.f32 %v164_v11, %v163_v10  ;;  %vm175_vm5 = vmxor %vm173_vm2, %vm355_vm4  ;;  %v166_v21 = vsub.f32 %v165_v12, %v164_v11 }
  0x18   : > { %v162_v14 = vsel %vm161_vm1, 1.0, %v157_v9  ;;  %327 = vrcp.f32 %v158_v13  ;;  %vm176_vm6 = vmand %vm174_vm3, %vm175_vm5 }
  0x19   : > { %v168_v16 = vmul.f32 2.0, %v162_v14  ;;  %v171_v18 = vmul.f32 4.0, %v162_v14  ;;  %329 = vrcp.f32 %v162_v14 }
  0x1b   : > { %v169_v19 = vadd.f32 %v168_v16, %v167_v15  ;;  %v172_v20 = vadd.f32 %v171_v18, %v170_v17 }
  0x1d   : > { %v177_v22 = vsel %vm176_vm6, %v169_v19, %v172_v20 }
  0x1e   : > { %v178_v23 = vsel %vm173_vm2, %v166_v21, %v177_v22 }
  0x25   : > { %v328_v24 = vpop.eup %327 }
  0x26   : > { %v330_v25 = vpop.eup %329  ;;  %v160_v26 = vmul.f32 %v328_v24, %v157_v9 }
  0x27   : > { %v180_v27 = vmul.f32 %v330_v25, %v178_v23 }
  0x28   : > { %297 = vst.msk [vmem:[%s390_s16 + $0x2] sm:$0x3] %vm392_vm0, %v160_v26 }
  0x29   : > { %v181_v28 = vmul.f32 0.16666667, %v180_v27 }
  0x2b   : > { %v182_v29 = vand.u32 2147483647, %v181_v28  ;;  %v190_v32 = vand.u32 2147483648, %v181_v28 }
  0x2d   : > { %v185_v30 = vfloor.f32 %v182_v29 }
  0x2f   : > { %v186_v31 = vsub.f32 %v182_v29, %v185_v30 }
  0x31   : > { %vm187_vm7 = vcmp.eq.f32.partialorder %v186_v31, 1.0 }
  0x32   : > { %v188_v33 = vsel %vm187_vm7, 0.0, %v186_v31 }
  0x33   : > { %v189_v34 = vand.u32 2147483647, %v188_v33 }
  0x35   : > { %v191_v35 = vor.u32 %v190_v32, %v189_v34 }
  0x37   : > { %vm192_vm8 = vcmp.ne.f32.partialorder %v191_v35, 0.0  ;;  %vm193_vm9 = vcmp.lt.f32.partialorder %v191_v35, 0.0  ;;  %v195_v36 = vadd.f32 1.0, %v191_v35 }
  0x38   : > { %vm194_vm10 = vmand %vm193_vm9, %vm192_vm8 }
  0x39   : > { %v196_v37 = vsel %vm194_vm10, %v195_v36, %v191_v35 }
  0x3a   : > { %v197_v38 = vmul.f32 6.2831855, %v196_v37 }
  0x3c   : > { %202 = vst.msk [vmem:[%s390_s16] sm:$0x3] %vm392_vm0, %v197_v38 }
  0x3d PF: > { %s11_s8 = sadd.s32 1, %s353_s8   ;;  %s418_s6 = smov %s349_s7 }
  0x3e   : > { %p8_p5 = scmp.ge.s32.totalorder %s11_s8, 4   ;;  %s419_s7 = smov %s421_s9 }
  0x40   :  { %10 = sbr.rel (!%p8_p5) target bundleno = 2 (0x2), region = 58 }

</bundles_post_ra>
